<compile_context>
chip_gen: v7x
topology: tpu7x:2x2x1
jax: 0.10.0
libtpu: 0.0.40
codegen_flags: <defaults>
</compile_context>

<pallas_src>
import math

import jax
import jax.numpy as jnp
from jax.experimental import pallas as pl
from jax.experimental.pallas import tpu as pltpu

# Small, config-implied shapes.
HIDDEN = 32
NUM_HEADS = 4
HEAD_DIM = HIDDEN // NUM_HEADS
SEQ = 8
BATCH = 2


def mha_kernel(x_ref, wqkv_ref, bqkv_ref, wo_ref, bo_ref, o_ref):
    """Fused MHA: one QKV matmul + head-batched attention + one output matmul.

    Ref shapes:
      x_ref    : (B*S, H)
      wqkv_ref : (H, 3H)   columns ordered (q|k|v) x (head, dim)  (torch layout)
      bqkv_ref : (1, 3H)
      wo_ref   : (H, H)    rows ordered (head, dim)
      bo_ref   : (1, H)
      o_ref    : (B*S, H)
    """
    B, S, H, NH, D = BATCH, SEQ, HIDDEN, NUM_HEADS, HEAD_DIM

    # --- 1) fused QKV projection: ONE MXU pass (16,32)@(32,96), f32 accumulate ---
    x = x_ref[...].astype(jnp.bfloat16)
    wqkv = wqkv_ref[...].astype(jnp.bfloat16)
    qkv = jnp.dot(x, wqkv, preferred_element_type=jnp.float32) + bqkv_ref[...]
    qkv = qkv.reshape(B, S, 3 * H)            # sublane-tile-aligned row split (16 -> 2x8)

    # --- 2) head split: static lane slices + leading-axis stack (no transposes) ---
    def split_heads(base):
        # slice head h's D lanes, stack heads on a new major axis -> (NH*B, S, D)
        hs = jnp.stack(
            [qkv[:, :, base + h * D: base + (h + 1) * D] for h in range(NH)], axis=0)
        return hs.reshape(NH * B, S, D).astype(jnp.bfloat16)

    q = split_heads(0)          # (NH*B, S, D)
    k = split_heads(H)
    v = split_heads(2 * H)

    # --- 3) attention, batched over the fused (head, batch) leading axis ---------
    scale = 1.0 / math.sqrt(D)
    scores = jnp.einsum("nqd,nkd->nqk", q, k,
                        preferred_element_type=jnp.float32) * scale      # (NH*B, S, S)
    scores = scores - jnp.max(scores, axis=-1, keepdims=True)            # stable softmax
    e = jnp.exp(scores)
    # Approx reciprocal -> EUP slot instead of a VALU divide (exact divide is the
    # fallback for tighter-tolerance users). Softmax math kept in f32.
    probs = e * pl.reciprocal(jnp.sum(e, axis=-1, keepdims=True), approx=True)
    # TODO(synk): attention-prob dropout omitted (eval-mode identity).
    ctx = jnp.einsum("nqk,nkd->nqd", probs.astype(jnp.bfloat16), v,
                     preferred_element_type=jnp.float32)                 # (NH*B, S, D)

    # --- 4) concat heads back onto lanes, ONE output matmul (16,32)@(32,32) ------
    ctx = ctx.reshape(NH, B, S, D)
    ctx_cat = jnp.concatenate([ctx[h] for h in range(NH)], axis=-1)      # (B, S, H)
    ctx2d = ctx_cat.reshape(B * S, H).astype(jnp.bfloat16)
    out = jnp.dot(ctx2d, wo_ref[...].astype(jnp.bfloat16),
                  preferred_element_type=jnp.float32) + bo_ref[...]
    # TODO(synk): hidden-dropout omitted (eval-mode identity).
    o_ref[...] = out.astype(o_ref.dtype)


def faster_mha(x, w_qkv, b_qkv, w_out, b_out):
    B, S, H = x.shape
    x2d = x.reshape(B * S, H)   # metadata-only; no per-call weight layout prep needed

    # Tiny, latency-bound kernel: give XLA an accurate (small) cost estimate.
    flops = (2 * B * S * H * 3 * H                      # QKV projection
             + 4 * B * NUM_HEADS * S * S * HEAD_DIM     # QK^T + P@V
             + 2 * B * S * H * H)                       # output projection
    transcendentals = B * NUM_HEADS * S * S             # softmax exps
    bytes_accessed = 4 * (x2d.size + w_qkv.size + b_qkv.size
                          + w_out.size + b_out.size + B * S * H)

    vmem = pl.BlockSpec(memory_space=pltpu.MemorySpace.VMEM)
    out2d = pl.pallas_call(
        mha_kernel,
        out_shape=jax.ShapeDtypeStruct((B * S, H), x.dtype),
        in_specs=[vmem, vmem, vmem, vmem, vmem],
        out_specs=vmem,
        cost_estimate=pl.CostEstimate(flops=flops,
                                      transcendentals=transcendentals,
                                      bytes_accessed=bytes_accessed),
    )(x2d, w_qkv, b_qkv, w_out, b_out)
    return out2d.reshape(B, S, H)


def mha_reference(x, w_qkv, b_qkv, w_out, b_out):
    """Pure-JAX f32 reference mirroring the PyTorch forward (eval mode)."""
    B, S, H = x.shape
    qkv = x @ w_qkv + b_qkv[0]
    q, k, v = jnp.split(qkv, 3, axis=-1)
    q = q.reshape(B, S, NUM_HEADS, HEAD_DIM).transpose(0, 2, 1, 3)
    k = k.reshape(B, S, NUM_HEADS, HEAD_DIM).transpose(0, 2, 1, 3)
    v = v.reshape(B, S, NUM_HEADS, HEAD_DIM).transpose(0, 2, 1, 3)
    scores = jnp.einsum("bhqd,bhkd->bhqk", q, k) / math.sqrt(HEAD_DIM)
    probs = jax.nn.softmax(scores, axis=-1)
    ctx = jnp.einsum("bhqk,bhkd->bhqd", probs, v)
    ctx = ctx.transpose(0, 2, 1, 3).reshape(B, S, H)
    return ctx @ w_out + b_out[0]


if __name__ == "__main__":
    key = jax.random.PRNGKey(0)
    kx, kw1, kb1, kw2, kb2 = jax.random.split(key, 5)

    x = jax.random.normal(kx, (BATCH, SEQ, HIDDEN), dtype=jnp.float32)
    # Deterministic synthetic parameters (shapes from module __init__, qkv_bias=True).
    w_qkv = jax.random.normal(kw1, (HIDDEN, 3 * HIDDEN), dtype=jnp.float32) * 0.02
    b_qkv = jax.random.normal(kb1, (1, 3 * HIDDEN), dtype=jnp.float32) * 0.02
    w_out = jax.random.normal(kw2, (HIDDEN, HIDDEN), dtype=jnp.float32) * 0.02
    b_out = jax.random.normal(kb2, (1, HIDDEN), dtype=jnp.float32) * 0.02

    out = jax.block_until_ready(faster_mha(x, w_qkv, b_qkv, w_out, b_out))

    ref = mha_reference(x, w_qkv, b_qkv, w_out, b_out)
    assert out.shape == (BATCH, SEQ, HIDDEN)
    # Tolerance covers bf16 matmul operands (f32 accumulate) + EUP approx reciprocal.
    assert jnp.allclose(out, ref, atol=5e-3, rtol=2e-2), "mismatch vs reference"

    print("KERNEL_OK")
</pallas_src>

<mosaic_0001>
module attributes {stable_mosaic.version = 11 : i64} {
  func.func @mha_kernel(%arg0: memref<16x32xf32, #tpu.memory_space<vmem>>, %arg1: memref<32x96xf32, #tpu.memory_space<vmem>>, %arg2: memref<1x96xf32, #tpu.memory_space<vmem>>, %arg3: memref<32x32xf32, #tpu.memory_space<vmem>>, %arg4: memref<1x32xf32, #tpu.memory_space<vmem>>, %arg5: memref<16x32xf32, #tpu.memory_space<vmem>>) attributes {dimension_semantics = [], scalar_prefetch = 0 : i64, scratch_operands = 0 : i64, tpu.core_type = #tpu.core_type<tc>} {
    %c0 = arith.constant 0 : index
    %c0_0 = arith.constant 0 : index
    %0 = vector.load %arg0[%c0, %c0_0] : memref<16x32xf32, #tpu.memory_space<vmem>>, vector<16x32xf32>
    %1 = arith.truncf %0 : vector<16x32xf32> to vector<16x32xbf16>
    %c0_1 = arith.constant 0 : index
    %c0_2 = arith.constant 0 : index
    %2 = vector.load %arg1[%c0_1, %c0_2] : memref<32x96xf32, #tpu.memory_space<vmem>>, vector<32x96xf32>
    %3 = arith.truncf %2 : vector<32x96xf32> to vector<32x96xbf16>
    %cst = arith.constant dense<0.000000e+00> : vector<16x96xf32>
    %4 = tpu.matmul %1, %3, %cst {dimension_numbers = #tpu.dot_dimension_numbers<[1], [0], [0], [1], [0, 0, 1, 1], [], []>} : vector<16x32xbf16>, vector<32x96xbf16>, vector<16x96xf32> -> vector<16x96xf32>
    %c0_3 = arith.constant 0 : index
    %c0_4 = arith.constant 0 : index
    %5 = vector.load %arg2[%c0_3, %c0_4] : memref<1x96xf32, #tpu.memory_space<vmem>>, vector<1x96xf32>
    %6 = vector.broadcast %5 : vector<1x96xf32> to vector<16x96xf32>
    %7 = arith.addf %4, %6 : vector<16x96xf32>
    %8 = vector.shape_cast %7 : vector<16x96xf32> to vector<2x8x96xf32>
    %9 = vector.extract_strided_slice %8 {offsets = [0, 0, 0], sizes = [2, 8, 8], strides = [1, 1, 1]} : vector<2x8x96xf32> to vector<2x8x8xf32>
    %10 = vector.extract_strided_slice %8 {offsets = [0, 0, 8], sizes = [2, 8, 8], strides = [1, 1, 1]} : vector<2x8x96xf32> to vector<2x8x8xf32>
    %11 = vector.extract_strided_slice %8 {offsets = [0, 0, 16], sizes = [2, 8, 8], strides = [1, 1, 1]} : vector<2x8x96xf32> to vector<2x8x8xf32>
    %12 = vector.extract_strided_slice %8 {offsets = [0, 0, 24], sizes = [2, 8, 8], strides = [1, 1, 1]} : vector<2x8x96xf32> to vector<2x8x8xf32>
    %13 = vector.shape_cast %9 : vector<2x8x8xf32> to vector<1x2x8x8xf32>
    %14 = vector.shape_cast %10 : vector<2x8x8xf32> to vector<1x2x8x8xf32>
    %15 = vector.shape_cast %11 : vector<2x8x8xf32> to vector<1x2x8x8xf32>
    %16 = vector.shape_cast %12 : vector<2x8x8xf32> to vector<1x2x8x8xf32>
    %17 = tpu.concatenate %13, %14, %15, %16 in 0 : vector<1x2x8x8xf32>, vector<1x2x8x8xf32>, vector<1x2x8x8xf32>, vector<1x2x8x8xf32> -> vector<4x2x8x8xf32>
    %18 = vector.shape_cast %17 : vector<4x2x8x8xf32> to vector<8x8x8xf32>
    %19 = arith.truncf %18 : vector<8x8x8xf32> to vector<8x8x8xbf16>
    %20 = vector.extract_strided_slice %8 {offsets = [0, 0, 32], sizes = [2, 8, 8], strides = [1, 1, 1]} : vector<2x8x96xf32> to vector<2x8x8xf32>
    %21 = vector.extract_strided_slice %8 {offsets = [0, 0, 40], sizes = [2, 8, 8], strides = [1, 1, 1]} : vector<2x8x96xf32> to vector<2x8x8xf32>
    %22 = vector.extract_strided_slice %8 {offsets = [0, 0, 48], sizes = [2, 8, 8], strides = [1, 1, 1]} : vector<2x8x96xf32> to vector<2x8x8xf32>
    %23 = vector.extract_strided_slice %8 {offsets = [0, 0, 56], sizes = [2, 8, 8], strides = [1, 1, 1]} : vector<2x8x96xf32> to vector<2x8x8xf32>
    %24 = vector.shape_cast %20 : vector<2x8x8xf32> to vector<1x2x8x8xf32>
    %25 = vector.shape_cast %21 : vector<2x8x8xf32> to vector<1x2x8x8xf32>
    %26 = vector.shape_cast %22 : vector<2x8x8xf32> to vector<1x2x8x8xf32>
    %27 = vector.shape_cast %23 : vector<2x8x8xf32> to vector<1x2x8x8xf32>
    %28 = tpu.concatenate %24, %25, %26, %27 in 0 : vector<1x2x8x8xf32>, vector<1x2x8x8xf32>, vector<1x2x8x8xf32>, vector<1x2x8x8xf32> -> vector<4x2x8x8xf32>
    %29 = vector.shape_cast %28 : vector<4x2x8x8xf32> to vector<8x8x8xf32>
    %30 = arith.truncf %29 : vector<8x8x8xf32> to vector<8x8x8xbf16>
    %31 = vector.extract_strided_slice %8 {offsets = [0, 0, 64], sizes = [2, 8, 8], strides = [1, 1, 1]} : vector<2x8x96xf32> to vector<2x8x8xf32>
    %32 = vector.extract_strided_slice %8 {offsets = [0, 0, 72], sizes = [2, 8, 8], strides = [1, 1, 1]} : vector<2x8x96xf32> to vector<2x8x8xf32>
    %33 = vector.extract_strided_slice %8 {offsets = [0, 0, 80], sizes = [2, 8, 8], strides = [1, 1, 1]} : vector<2x8x96xf32> to vector<2x8x8xf32>
    %34 = vector.extract_strided_slice %8 {offsets = [0, 0, 88], sizes = [2, 8, 8], strides = [1, 1, 1]} : vector<2x8x96xf32> to vector<2x8x8xf32>
    %35 = vector.shape_cast %31 : vector<2x8x8xf32> to vector<1x2x8x8xf32>
    %36 = vector.shape_cast %32 : vector<2x8x8xf32> to vector<1x2x8x8xf32>
    %37 = vector.shape_cast %33 : vector<2x8x8xf32> to vector<1x2x8x8xf32>
    %38 = vector.shape_cast %34 : vector<2x8x8xf32> to vector<1x2x8x8xf32>
    %39 = tpu.concatenate %35, %36, %37, %38 in 0 : vector<1x2x8x8xf32>, vector<1x2x8x8xf32>, vector<1x2x8x8xf32>, vector<1x2x8x8xf32> -> vector<4x2x8x8xf32>
    %40 = vector.shape_cast %39 : vector<4x2x8x8xf32> to vector<8x8x8xf32>
    %41 = arith.truncf %40 : vector<8x8x8xf32> to vector<8x8x8xbf16>
    "tpu.trace_start"() <{level = 10 : i32, message = "nqd,nkd->nqk"}> : () -> ()
    %cst_5 = arith.constant dense<0.000000e+00> : vector<8x8x8xf32>
    %42 = tpu.matmul %19, %30, %cst_5 {dimension_numbers = #tpu.dot_dimension_numbers<[2], [2], [1], [1], [0, 0, 0, 1, 1, 1], [0], [0]>} : vector<8x8x8xbf16>, vector<8x8x8xbf16>, vector<8x8x8xf32> -> vector<8x8x8xf32>
    "tpu.trace_stop"() : () -> ()
    %cst_6 = arith.constant 0.353553385 : f32
    %43 = vector.broadcast %cst_6 : f32 to vector<8x8x8xf32>
    %44 = arith.mulf %42, %43 : vector<8x8x8xf32>
    %cst_7 = arith.constant dense<0xFF800000> : vector<8x8xf32>
    %45 = vector.multi_reduction <maximumf>, %44, %cst_7 [2] : vector<8x8x8xf32> to vector<8x8xf32>
    %46 = vector.shape_cast %45 : vector<8x8xf32> to vector<8x8x1xf32>
    %47 = vector.broadcast %46 : vector<8x8x1xf32> to vector<8x8x8xf32>
    %48 = arith.subf %44, %47 : vector<8x8x8xf32>
    %49 = math.exp %48 : vector<8x8x8xf32>
    %cst_8 = arith.constant dense<0.000000e+00> : vector<8x8xf32>
    %50 = vector.multi_reduction <add>, %49, %cst_8 [2] : vector<8x8x8xf32> to vector<8x8xf32>
    %51 = vector.shape_cast %50 : vector<8x8xf32> to vector<8x8x1xf32>
    %52 = tpu.reciprocal %51 {approx = true} : vector<8x8x1xf32> -> vector<8x8x1xf32>
    %53 = vector.broadcast %52 : vector<8x8x1xf32> to vector<8x8x8xf32>
    %54 = arith.mulf %49, %53 : vector<8x8x8xf32>
    %55 = arith.truncf %54 : vector<8x8x8xf32> to vector<8x8x8xbf16>
    "tpu.trace_start"() <{level = 10 : i32, message = "nqk,nkd->nqd"}> : () -> ()
    %cst_9 = arith.constant dense<0.000000e+00> : vector<8x8x8xf32>
    %56 = tpu.matmul %55, %41, %cst_9 {dimension_numbers = #tpu.dot_dimension_numbers<[2], [1], [1], [2], [0, 0, 0, 1, 1, 2], [0], [0]>} : vector<8x8x8xbf16>, vector<8x8x8xbf16>, vector<8x8x8xf32> -> vector<8x8x8xf32>
    "tpu.trace_stop"() : () -> ()
    %57 = vector.shape_cast %56 : vector<8x8x8xf32> to vector<4x2x8x8xf32>
    %58 = vector.extract_strided_slice %57 {offsets = [0, 0, 0, 0], sizes = [1, 2, 8, 8], strides = [1, 1, 1, 1]} : vector<4x2x8x8xf32> to vector<1x2x8x8xf32>
    %59 = vector.shape_cast %58 : vector<1x2x8x8xf32> to vector<2x8x8xf32>
    %60 = vector.extract_strided_slice %57 {offsets = [1, 0, 0, 0], sizes = [1, 2, 8, 8], strides = [1, 1, 1, 1]} : vector<4x2x8x8xf32> to vector<1x2x8x8xf32>
    %61 = vector.shape_cast %60 : vector<1x2x8x8xf32> to vector<2x8x8xf32>
    %62 = vector.extract_strided_slice %57 {offsets = [2, 0, 0, 0], sizes = [1, 2, 8, 8], strides = [1, 1, 1, 1]} : vector<4x2x8x8xf32> to vector<1x2x8x8xf32>
    %63 = vector.shape_cast %62 : vector<1x2x8x8xf32> to vector<2x8x8xf32>
    %64 = vector.extract_strided_slice %57 {offsets = [3, 0, 0, 0], sizes = [1, 2, 8, 8], strides = [1, 1, 1, 1]} : vector<4x2x8x8xf32> to vector<1x2x8x8xf32>
    %65 = vector.shape_cast %64 : vector<1x2x8x8xf32> to vector<2x8x8xf32>
    %66 = tpu.concatenate %59, %61, %63, %65 in 2 : vector<2x8x8xf32>, vector<2x8x8xf32>, vector<2x8x8xf32>, vector<2x8x8xf32> -> vector<2x8x32xf32>
    %67 = vector.shape_cast %66 : vector<2x8x32xf32> to vector<16x32xf32>
    %68 = arith.truncf %67 : vector<16x32xf32> to vector<16x32xbf16>
    %c0_10 = arith.constant 0 : index
    %c0_11 = arith.constant 0 : index
    %69 = vector.load %arg3[%c0_10, %c0_11] : memref<32x32xf32, #tpu.memory_space<vmem>>, vector<32x32xf32>
    %70 = arith.truncf %69 : vector<32x32xf32> to vector<32x32xbf16>
    %cst_12 = arith.constant dense<0.000000e+00> : vector<16x32xf32>
    %71 = tpu.matmul %68, %70, %cst_12 {dimension_numbers = #tpu.dot_dimension_numbers<[1], [0], [0], [1], [0, 0, 1, 1], [], []>} : vector<16x32xbf16>, vector<32x32xbf16>, vector<16x32xf32> -> vector<16x32xf32>
    %c0_13 = arith.constant 0 : index
    %c0_14 = arith.constant 0 : index
    %72 = vector.load %arg4[%c0_13, %c0_14] : memref<1x32xf32, #tpu.memory_space<vmem>>, vector<1x32xf32>
    %73 = vector.broadcast %72 : vector<1x32xf32> to vector<16x32xf32>
    %74 = arith.addf %71, %73 : vector<16x32xf32>
    %c0_15 = arith.constant 0 : index
    %c0_16 = arith.constant 0 : index
    %75 = vector.load %arg5[%c0_15, %c0_16] : memref<16x32xf32, #tpu.memory_space<vmem>>, vector<16x32xf32>
    tpu.vector_store %arg5[%c0_15, %c0_16], %74 {strides = array<i32>} : memref<16x32xf32, #tpu.memory_space<vmem>>, vector<16x32xf32>,
    return
  }
}

</mosaic_0001>

<bundles_post_ra>
// kernel: tpu_custom_call.1
= control target key start
LH: loop header
LB: loop body
LE: loop exit
PB: predicated region body
PF: predicated region fallthrough
CT: control target
= control target key end

     0   :  { %10 = vsyncpa [#allocation3], 0  ;;  %s1792_s0 = inlined_call_operand.hbm [shape: f32[16,32], index: 0, kind: input, shape index: {}]   ;;  %s1793_s1 = inlined_call_operand.hbm [shape: f32[32,96], index: 1, kind: input, shape index: {}]   ;;  %s1794_s2 = inlined_call_operand.vmem [shape: f32[1,96], index: 2, kind: input, shape index: {}]   ;;  %s1795_s3 = inlined_call_operand.hbm [shape: f32[32,32], index: 3, kind: input, shape index: {}]   ;;  %s1796_s4 = inlined_call_operand.vmem [shape: f32[1,32], index: 4, kind: input, shape index: {}]   ;;  %s1797_s5 = inlined_call_operand.hbm [shape: f32[16,32], index: 5, kind: output, shape index: {}]  }
   0x1   :  { %11 = vsyncpa [#allocation6], 0 }
   0x2   :  { %12 = vsyncpa [#allocation4], 0  ;;  %s1485_s18 = smov [#allocation5]   ;;  %s1486_s20 = smov [#allocation2]  }
   0x3   :  { %s30_s19 = sshll.u32 %s1485_s18, 4  ;;  %s18_s21 = sshll.u32 %s1486_s20, 4  ;;  %s31_s19 = int_to_ptr.vmem [resolvable:$true] %s30_s19  ;;  %s1530_s21 = int_to_ptr.vmem [resolvable:$true] %s18_s21 }
   0x4   :  { %s1391_s24 = scalar_lea.hbm %s1793_s1, 512 }
   0x5   :  { %p1392_p0 = scmp.ne.s32.totalorder %s1793_s1, %s1391_s24  ;;  %p1395_p1 = scmp.lt.u32.totalorder %s1391_s24, %s1793_s1 }
   0x7   :  { %p1397_p2 = pnand %p1395_p1, %p1392_p0 }
   0x9   :  { %1400 = shalt.err (!%p1397_p2)
}
   0xa   :  { %s1401_s29 = scalar_lea.vmem %s31_s19, 512  ;;  %p1406_p4 = scmp.lt.s32.totalorder %s31_s19, %s31_s19 }
   0xb   :  { %p1402_p3 = scmp.ne.s32.totalorder %s31_s19, %s1401_s29  ;;  %p1407_p5 = scmp.lt.s32.totalorder %s1401_s29, %s1401_s29 }
   0xd   :  { %p1408_p6 = por %p1407_p5, %p1406_p4 }
   0xf   :  { %p1409_p7 = pnand %p1408_p6, %p1402_p3 }
  0x11   :  { %1412 = shalt.err (!%p1409_p7)
}
  0x12   :  { %s1487_s30 = smov 128   ;;  %s1488_s6 = smov 8  }
  0x13   :  { %36 = dma.hbm_to_vmem [thread:$0]  %s1793_s1, 512, %s31_s19, [#allocation6], %s1487_s30, %s1487_s30, %s1488_s6  }
  0x14   :  { %s1413_s11 = scalar_lea.hbm %s1792_s0, 256 }
  0x15   :  { %p1414_p8 = scmp.ne.s32.totalorder %s1792_s0, %s1413_s11  ;;  %p1417_p9 = scmp.lt.u32.totalorder %s1413_s11, %s1792_s0 }
  0x17   :  { %p1419_p10 = pnand %p1417_p9, %p1414_p8 }
  0x19   :  { %1422 = shalt.err (!%p1419_p10)
}
  0x1a   :  { %s1423_s16 = scalar_lea.vmem %s1530_s21, 256  ;;  %p1428_p12 = scmp.lt.s32.totalorder %s1530_s21, %s1530_s21 }
  0x1b   :  { %p1424_p11 = scmp.ne.s32.totalorder %s1530_s21, %s1423_s16  ;;  %p1429_p13 = scmp.lt.s32.totalorder %s1423_s16, %s1423_s16 }
  0x1d   :  { %p1430_p0 = por %p1429_p13, %p1428_p12 }
  0x1f   :  { %p1431_p1 = pnand %p1430_p0, %p1424_p11 }
  0x21   :  { %1434 = shalt.err (!%p1431_p1)
}
  0x22   :  { %24 = dma.hbm_to_vmem [thread:$0]  %s1792_s0, 256, %s1530_s21, [#allocation3], %s1487_s30, %s1487_s30, %s1488_s6  }
  0x23   :  { %s1489_s18 = smov [#allocation7]   ;;  %s1435_s23 = scalar_lea.hbm %s1795_s3, 512 }
  0x24   :  { %s44_s19 = sshll.u32 %s1489_s18, 4  ;;  %p1436_p2 = scmp.ne.s32.totalorder %s1795_s3, %s1435_s23  ;;  %s45_s19 = int_to_ptr.vmem [resolvable:$true] %s44_s19 }
  0x25   :  { %p1439_p3 = scmp.lt.u32.totalorder %s1435_s23, %s1795_s3 }
  0x27   :  { %p1441_p4 = pnand %p1439_p3, %p1436_p2 }
  0x29   :  { %1444 = shalt.err (!%p1441_p4)
}
  0x2a   :  { %s1445_s28 = scalar_lea.vmem %s45_s19, 512  ;;  %p1450_p6 = scmp.lt.s32.totalorder %s45_s19, %s45_s19 }
  0x2b   :  { %p1446_p5 = scmp.ne.s32.totalorder %s45_s19, %s1445_s28  ;;  %p1451_p7 = scmp.lt.s32.totalorder %s1445_s28, %s1445_s28 }
  0x2d   :  { %p1452_p8 = por %p1451_p7, %p1450_p6 }
  0x2f   :  { %p1453_p9 = pnand %p1452_p8, %p1446_p5 }
  0x31   :  { %1456 = shalt.err (!%p1453_p9)
}
  0x32   :  { %50 = dma.hbm_to_vmem [thread:$0]  %s1795_s3, 512, %s45_s19, [#allocation6], %s1487_s30, %s1487_s30, %s1488_s6  }
  0x33   :  { %1479 = dma.done.wait [#allocation3], 256  }
  0x34   :  { %1480 = vsyncadd [#allocation3], 4294967040 }
  0x35   :  { %1481 = dma.done.wait [#allocation6], 1024  }
  0x36   :  { %1482 = vsyncadd [#allocation6], 4294966272  ;;  %v1490_v0 = vmov 0.0   ;;  %vm1491_vm0 = vmmov 0   ;;  %v66_v1 = vld [vmem:[#allocation5] sm:$0xff]  ;;  %v67_v2 = vld [vmem:[#allocation5 + $0x8] sm:$0xff] }
  0x37   :  { %1202 = vmatprep.subr.bf16.mxu0 %v1490_v0  ;;  %1206 = vmatprep.mubr.msk.bf16.mxu0 %vm1491_vm0, %v1490_v0  ;;  %v68_v3 = vld [vmem:[#allocation5 + $0x10] sm:$0xff]  ;;  %v70_v4 = vpack.c.bf16 %v67_v2, %v66_v1  ;;  %v69_v5 = vld [vmem:[#allocation5 + $0x18] sm:$0xff]  ;;  %vm79_vm1 = vcmask 261120   ;;  %s1492_s7 = smov 104   ;;  %s1493_s8 = smov 120   ;;  %vm155_vm2 = vcmask 64512  }
  0x38   :  { %1210 = vmatprep.subr.bf16.mxu1 %v1490_v0  ;;  %1212 = vmatprep.mubr.msk.bf16.mxu1 %vm1491_vm0, %v1490_v0  ;;  %v71_v6 = vpack.c.bf16 %v69_v5, %v68_v3  ;;  %v63_v7 = vld [vmem:[#allocation2] sm:$0xff]  ;;  %v64_v8 = vld [vmem:[#allocation2 + $0x8] sm:$0xff]  ;;  %s1494_s9 = smov 96   ;;  %s1495_s10 = smov 112   ;;  %vm654_vm3 = vcmask 1043456   ;;  %vm1060_vm4 = vcmask 130048  }
  0x39   :  { %1203 = vmatpush3.bf16.msra.mxu0 %v70_v4  ;;  %v65_v9 = vpack.c.bf16 %v64_v8, %v63_v7  ;;  %v1144_v10 = vld [vmem:[%s1794_s2] ss:$0 sm:$0xff]  ;;  %s1496_s2 = smov 64   ;;  %s1497_s11 = smov 16   ;;  %vm1063_vm5 = vcmask 195584  }
  0x3a   :  { %1204 = vmatprep.subr.bf16.mxu0 %v1490_v0  ;;  %s1498_s12 = smov 24   ;;  %s1499_s15 = smov [#allocation8]  }
  0x3b   :  { %s1131_s16 = sshll.u32 %s1499_s15, 4  ;;  %s1132_s16 = int_to_ptr.vmem [resolvable:$true] %s1131_s16 }
  0x3c   :  { %s1457_s1 = scalar_lea.vmem %s1132_s16, 256  ;;  %p1462_p11 = scmp.lt.s32.totalorder %s1132_s16, %s1132_s16 }
  0x3d   :  { %1205 = vmatpush3.bf16.msra.mxu0 %v71_v6  ;;  %p1458_p10 = scmp.ne.s32.totalorder %s1132_s16, %s1457_s1  ;;  %p1463_p12 = scmp.lt.s32.totalorder %s1457_s1, %s1457_s1 }
  0x3e   :  { %1216 = vmatprep.subr.bf16.mxu0 %v1490_v0 }
  0x3f   :  { %p1464_p13 = por %p1463_p12, %p1462_p11 }
  0x40   :  { %1207 = vmatmul.mubr.msk.bf16.vlgmr.msra.gmra.mrb[0].mxu0 %vm79_vm1, %v65_v9 }
  0x41   :  { %1218 = vmatprep.mubr.msk.bf16.mxu0 %vm1491_vm0, %v1490_v0  ;;  %p1465_p0 = pnand %p1464_p13, %p1458_p10 }
 0x113   :  { %v117_v11 = vpop.f32.mrb[0].mxu0 }
 0x114   :  { %v1208_v12 = vpop.f32.mrb[1].mxu0  ;;  %v118_v14 = vadd.f32 %v1144_v10, %v117_v11 }
 0x115   :  { %v120_v13 = vpop.f32.mrb[2].mxu0 }
 0x116   :  { %v121_v15 = vadd.f32 %v1144_v10, %v120_v13  ;;  %v1209_v16 = vpop.f32.mrb[3].mxu0  ;;  %v144_v18 = vpack.c.bf16 %v118_v14, %v118_v14 }
 0x118   :  { %v1339_v17 = vpack.i.bf16 %v121_v15, %v118_v14  ;;  %v145_v19 = vpack.c.bf16 %v121_v15, %v121_v15 }
 0x11a   :  { %1340 = vrot.lane.b32.xlu1 %v1339_v17, %s1492_s7  ;;  %1330 = vrot.lane.b32.xlu0 %v1339_v17, %s1493_s8 }
 0x11e   :  { %153 = vrot.lane.b32.xlu1 %v144_v18, %s1494_s9  ;;  %1335 = vrot.lane.b32.xlu0 %v1339_v17, %s1495_s10 }
 0x122   :  { %203 = vrot.lane.b32.xlu0 %v145_v19, %s1494_s9 }
 0x18c   :  { %v1341_v20 = vpop.permute.xlu1 %1340  ;;  %v1331_v21 = vpop.permute.xlu0 %1330 }
 0x18d   :  { %v1333_v22 = vunpack.i.h.bf16 %v1331_v21  ;;  %v1332_v23 = vunpack.i.l.bf16 %v1331_v21  ;;  %v1342_v31 = vunpack.i.l.bf16 %v1341_v20  ;;  %v1343_v34 = vunpack.i.h.bf16 %v1341_v20 }
 0x18f   :  { %v1598_v24 = vpack.c.bf16 %v1333_v22, %v1333_v22  ;;  %v1600_v25 = vpack.c.bf16 %v1332_v23, %v1332_v23  ;;  %v1617_v37 = vpack.c.bf16 %v1342_v31, %v1342_v31  ;;  %v1620_v38 = vpack.c.bf16 %v1343_v34, %v1343_v34 }
 0x190   :  { %v154_v26 = vpop.permute.xlu1 %153  ;;  %v1336_v27 = vpop.permute.xlu0 %1335 }
 0x191   :  { %v1338_v28 = vunpack.i.h.bf16 %v1336_v27  ;;  %v1337_v29 = vunpack.i.l.bf16 %v1336_v27  ;;  %252 = vrot.lane.b32.xlu1 %v1600_v25, %s1494_s9  ;;  %301 = vrot.lane.b32.xlu0 %v1598_v24, %s1494_s9  ;;  %v160_v30 = vsel %vm155_vm2, %v154_v26, 0 }
 0x192   :  { %1211 = vmatpush3.bf16.xpose.msra.mxu1 %v160_v30 }
 0x193   :  { %v1607_v32 = vpack.c.bf16 %v1338_v28, %v1338_v28  ;;  %v1609_v33 = vpack.c.bf16 %v1337_v29, %v1337_v29  ;;  %1222 = vmatprep.subr.bf16.mxu1 %v1490_v0 }
 0x194   :  { %v204_v35 = vpop.permute.xlu0 %203 }
 0x195   :  { %v209_v36 = vsel %vm155_vm2, %v204_v35, 0  ;;  %350 = vrot.lane.b32.xlu1 %v1609_v33, %s1494_s9  ;;  %399 = vrot.lane.b32.xlu0 %v1607_v32, %s1494_s9 }
 0x196   :  { %1217 = vmatpush3.bf16.xpose.msra.mxu0 %v209_v36 }
 0x197   :  { %1228 = vmatprep.subr.bf16.mxu0 %v1490_v0 }
 0x199   :  { %1213 = vmatmul.mubr.msk.bf16.vlgmr.msra.gmra.mrb[0].mxu1 %vm155_vm2, %v144_v18  ;;  %448 = vrot.lane.b32.xlu1 %v1617_v37, %s1494_s9 }
 0x19a   :  { %497 = vrot.lane.b32.xlu0 %v1620_v38, %s1494_s9  ;;  %1224 = vmatprep.mubr.msk.bf16.mxu1 %vm1491_vm0, %v1490_v0 }
 0x19d   :  { %698 = vrot.lane.b32.xlu1 %v145_v19, %s1496_s2  ;;  %1219 = vmatmul.mubr.msk.bf16.vlgmr.msra.gmra.mrb[4].mxu0 %vm155_vm2, %v145_v19 }
 0x19e   :  { %649 = vrot.lane.b32.xlu0 %v144_v18, %s1496_s2  ;;  %1230 = vmatprep.mubr.msk.bf16.mxu0 %vm1491_vm0, %v1490_v0 }
 0x203   :  { %v253_v39 = vpop.permute.xlu1 %252  ;;  %v302_v40 = vpop.permute.xlu0 %301 }
 0x204   :  { %v258_v41 = vsel %vm155_vm2, %v253_v39, 0  ;;  %v307_v42 = vsel %vm155_vm2, %v302_v40, 0 }
 0x205   :  { %1223 = vmatpush3.bf16.xpose.msra.mxu1 %v258_v41  ;;  %1229 = vmatpush3.bf16.xpose.msra.mxu0 %v307_v42 }
 0x206   :  { %1234 = vmatprep.subr.bf16.mxu1 %v1490_v0  ;;  %1240 = vmatprep.subr.bf16.mxu0 %v1490_v0 }
 0x207   :  { %v351_v43 = vpop.permute.xlu1 %350  ;;  %v400_v44 = vpop.permute.xlu0 %399 }
 0x208   :  { %v356_v45 = vsel %vm155_vm2, %v351_v43, 0  ;;  %v405_v46 = vsel %vm155_vm2, %v400_v44, 0 }
 0x20b   :  { %v449_v47 = vpop.permute.xlu1 %448 }
 0x20c   :  { %1225 = vmatmul.mubr.msk.bf16.vlgmr.msra.gmra.mrb[4].mxu1 %vm155_vm2, %v1600_v25  ;;  %1231 = vmatmul.mubr.msk.bf16.vlgmr.msra.gmra.mrb[8].mxu0 %vm155_vm2, %v1598_v24  ;;  %v498_v48 = vpop.permute.xlu0 %497  ;;  %v454_v49 = vsel %vm155_vm2, %v449_v47, 0 }
 0x20d   :  { %1235 = vmatpush3.bf16.xpose.msra.mxu1 %v356_v45  ;;  %1241 = vmatpush3.bf16.xpose.msra.mxu0 %v405_v46  ;;  %v503_v50 = vsel %vm155_vm2, %v498_v48, 0 }
 0x20e   :  { %1236 = vmatprep.mubr.msk.bf16.mxu1 %vm1491_vm0, %v1490_v0  ;;  %1242 = vmatprep.mubr.msk.bf16.mxu0 %vm1491_vm0, %v1490_v0 }
 0x20f   :  { %1246 = vmatprep.subr.bf16.mxu1 %v1490_v0  ;;  %1252 = vmatprep.subr.bf16.mxu0 %v1490_v0  ;;  %v699_v51 = vpop.permute.xlu1 %698 }
 0x210   :  { %v650_v52 = vpop.permute.xlu0 %649  ;;  %v704_v53 = vsel %vm654_vm3, %v699_v51, 0 }
 0x211   :  { %v656_v54 = vsel %vm654_vm3, %v650_v52, 0 }
 0x214   :  { %1237 = vmatmul.mubr.msk.bf16.vlgmr.msra.gmra.mrb[8].mxu1 %vm155_vm2, %v1609_v33  ;;  %1243 = vmatmul.mubr.msk.bf16.vlgmr.msra.gmra.mrb[12].mxu0 %vm155_vm2, %v1607_v32 }
 0x215   :  { %1247 = vmatpush3.bf16.xpose.msra.mxu1 %v454_v49  ;;  %1253 = vmatpush3.bf16.xpose.msra.mxu0 %v503_v50 }
 0x216   :  { %1248 = vmatprep.mubr.msk.bf16.mxu1 %vm1491_vm0, %v1490_v0  ;;  %1254 = vmatprep.mubr.msk.bf16.mxu0 %vm1491_vm0, %v1490_v0 }
 0x217   :  { %1258 = vmatprep.subr.bf16.mxu1 %v1490_v0  ;;  %1264 = vmatprep.subr.bf16.mxu0 %v1490_v0 }
 0x21c   :  { %1249 = vmatmul.mubr.msk.bf16.vlgmr.msra.gmra.mrb[12].mxu1 %vm155_vm2, %v1617_v37  ;;  %1255 = vmatmul.mubr.msk.bf16.vlgmr.msra.gmra.mrb[16].mxu0 %vm155_vm2, %v1620_v38 }
 0x21d   :  { %1259 = vmatpush3.bf16.msra.mxu1 %v656_v54  ;;  %1265 = vmatpush3.bf16.msra.mxu0 %v704_v53 }
 0x21e   :  { %1260 = vmatprep.mubr.msk.bf16.mxu1 %vm1491_vm0, %v1490_v0  ;;  %1266 = vmatprep.mubr.msk.bf16.mxu0 %vm1491_vm0, %v1490_v0 }
 0x21f   :  { %1270 = vmatprep.subr.bf16.mxu1 %v1490_v0  ;;  %1276 = vmatprep.subr.bf16.mxu0 %v1490_v0 }
 0x26c   :  { %v196_v55 = vpop.f32.mrb[0].mxu1 }
 0x26d   :  { %v545_v56 = vmul.f32 0.35355338, %v196_v55  ;;  %v1214_v57 = vpop.f32.mrb[1].mxu1 }
 0x26e   :  { %v199_v58 = vpop.f32.mrb[2].mxu1 }
 0x26f   :  { %v1215_v59 = vpop.f32.mrb[3].mxu1  ;;  %v553_v60 = vsel %vm155_vm2, %v545_v56, -inf }
 0x270   :  { %554 = vmax.xlane.f32.xlu1 %v553_v60  ;;  %v245_v61 = vpop.f32.mrb[4].mxu0 }
 0x271   :  { %v546_v62 = vmul.f32 0.35355338, %v245_v61  ;;  %v1220_v63 = vpop.f32.mrb[5].mxu0 }
 0x272   :  { %v248_v1 = vpop.f32.mrb[6].mxu0 }
 0x273   :  { %v1221_v2 = vpop.f32.mrb[7].mxu0  ;;  %v556_v3 = vsel %vm155_vm2, %v546_v62, -inf }
 0x274   :  { %557 = vmax.xlane.f32.xlu0 %v556_v3 }
 0x2df   :  { %v294_v4 = vpop.f32.mrb[4].mxu1  ;;  %v343_v5 = vpop.f32.mrb[8].mxu0 }
 0x2e0   :  { %v547_v6 = vmul.f32 0.35355338, %v294_v4  ;;  %v548_v7 = vmul.f32 0.35355338, %v343_v5  ;;  %v1226_v8 = vpop.f32.mrb[5].mxu1  ;;  %v1232_v9 = vpop.f32.mrb[9].mxu0 }
 0x2e1   :  { %v297_v10 = vpop.f32.mrb[6].mxu1  ;;  %v346_v11 = vpop.f32.mrb[10].mxu0 }
 0x2e2   :  { %v1227_v12 = vpop.f32.mrb[7].mxu1  ;;  %v1233_v13 = vpop.f32.mrb[11].mxu0  ;;  %v559_v14 = vsel %vm155_vm2, %v547_v6, -inf  ;;  %v562_v15 = vsel %vm155_vm2, %v548_v7, -inf }
 0x2e3   :  { %560 = vmax.xlane.f32.xlu0 %v559_v14  ;;  %563 = vmax.xlane.f32.xlu1 %v562_v15 }
 0x2e7   :  { %v392_v16 = vpop.f32.mrb[8].mxu1  ;;  %v441_v17 = vpop.f32.mrb[12].mxu0 }
 0x2e8   :  { %v1678_v18 = vmul.f32 0.35355338, %v392_v16  ;;  %v550_v19 = vmul.f32 0.35355338, %v441_v17  ;;  %v1238_v20 = vpop.f32.mrb[9].mxu1  ;;  %v1244_v21 = vpop.f32.mrb[13].mxu0 }
 0x2e9   :  { %v395_v22 = vpop.f32.mrb[10].mxu1  ;;  %v444_v23 = vpop.f32.mrb[14].mxu0 }
 0x2ea   :  { %v1239_v26 = vpop.f32.mrb[11].mxu1  ;;  %v1245_v27 = vpop.f32.mrb[15].mxu0  ;;  %v565_v28 = vsel %vm155_vm2, %v1678_v18, -inf  ;;  %v568_v29 = vsel %vm155_vm2, %v550_v19, -inf }
 0x2eb   :  { %566 = vmax.xlane.f32.xlu0 %v565_v28  ;;  %569 = vmax.xlane.f32.xlu1 %v568_v29 }
 0x2ef   :  { %v490_v30 = vpop.f32.mrb[12].mxu1  ;;  %v539_v31 = vpop.f32.mrb[16].mxu0 }
 0x2f0   :  { %v1683_v34 = vmul.f32 0.35355338, %v490_v30  ;;  %v552_v35 = vmul.f32 0.35355338, %v539_v31  ;;  %v1250_v36 = vpop.f32.mrb[13].mxu1  ;;  %v1256_v39 = vpop.f32.mrb[17].mxu0 }
 0x2f1   :  { %v493_v40 = vpop.f32.mrb[14].mxu1  ;;  %v542_v41 = vpop.f32.mrb[18].mxu0 }
 0x2f2   :  { %v1251_v42 = vpop.f32.mrb[15].mxu1  ;;  %v1257_v43 = vpop.f32.mrb[19].mxu0  ;;  %v571_v44 = vsel %vm155_vm2, %v1683_v34, -inf  ;;  %v574_v45 = vsel %vm155_vm2, %v552_v35, -inf }
 0x2f3   :  { %572 = vmax.xlane.f32.xlu0 %v571_v44  ;;  %575 = vmax.xlane.f32.xlu1 %v574_v45 }
 0x2fd   :  { %v555_v46 = vpop.xlane.xlu1 %554 }
 0x2fe   :  { %v577_v48 = vsub.f32 %v545_v56, %v555_v46 }
 0x300   :  { %v585_v50 = vmul.f32 1.442695, %v577_v48 }
 0x301   :  { %v558_v47 = vpop.xlane.xlu0 %557 }
 0x302   :  { %v578_v49 = vsub.f32 %v546_v62, %v558_v47  ;;  %1359 = vpow2.f32 %v585_v50 }
 0x304   :  { %746 = vrot.lane.b32.xlu1 %v1600_v25, %s1496_s2  ;;  %v587_v51 = vmul.f32 1.442695, %v578_v49 }
 0x306   :  { %1361 = vpow2.f32 %v587_v51 }
 0x309   :  { %794 = vrot.lane.b32.xlu0 %v1598_v24, %s1496_s2 }
 0x30c   :  { %v1360_v52 = vpop.eup %1359 }
 0x30d   :  { %v601_v54 = vsel %vm155_vm2, %v1360_v52, 0.0 }
 0x310   :  { %v1362_v53 = vpop.eup %1361 }
 0x311   :  { %v604_v55 = vsel %vm155_vm2, %v1362_v53, 0.0 }
 0x328   :  { %602 = vadd.xlane.f32.xlu0 %v601_v54  ;;  %605 = vadd.xlane.f32.xlu1 %v604_v55 }
 0x339   :  { %842 = vrot.lane.b32.xlu1 %v1609_v33, %s1496_s2 }
 0x370   :  { %v561_v24 = vpop.xlane.xlu0 %560  ;;  %v564_v25 = vpop.xlane.xlu1 %563 }
 0x371   :  { %v579_v57 = vsub.f32 %v547_v6, %v561_v24  ;;  %v580_v56 = vsub.f32 %v548_v7, %v564_v25 }
 0x373   :  { %v589_v58 = vmul.f32 1.442695, %v579_v57  ;;  %v591_v59 = vmul.f32 1.442695, %v580_v56 }
 0x375   :  { %1363 = vpow2.f32 %v589_v58 }
 0x376   :  { %1365 = vpow2.f32 %v591_v59 }
 0x378   :  { %v570_v60 = vpop.xlane.xlu1 %569  ;;  %v567_v10 = vpop.xlane.xlu0 %566 }
 0x379   :  { %v582_v61 = vsub.f32 %v550_v19, %v570_v60  ;;  %v581_v11 = vsub.f32 %v1678_v18, %v567_v10 }
 0x37b   :  { %v595_v62 = vmul.f32 1.442695, %v582_v61  ;;  %v593_v13 = vmul.f32 1.442695, %v581_v11 }
 0x37d   :  { %1367 = vpow2.f32 %v595_v62 }
 0x37f   :  { %v1696_v63 = vpop.eup %1363 }
 0x380   :  { %v1698_v1 = vpop.eup %1365  ;;  %v576_v2 = vpop.xlane.xlu1 %575  ;;  %v607_v33 = vsel %vm155_vm2, %v1696_v63, 0.0 }
 0x381   :  { %v584_v3 = vsub.f32 %v552_v35, %v576_v2  ;;  %608 = vadd.xlane.f32.xlu0 %v607_v33  ;;  %v610_v4 = vsel %vm155_vm2, %v1698_v1, 0.0  ;;  %v573_v12 = vpop.xlane.xlu0 %572 }
 0x382   :  { %611 = vadd.xlane.f32.xlu1 %v610_v4  ;;  %v583_v14 = vsub.f32 %v1683_v34, %v573_v12 }
 0x383   :  { %v599_v5 = vmul.f32 1.442695, %v584_v3 }
 0x384   :  { %v597_v15 = vmul.f32 1.442695, %v583_v14  ;;  %v747_v17 = vpop.permute.xlu1 %746 }
 0x385   :  { %1369 = vpow2.f32 %v599_v5  ;;  %v795_v16 = vpop.permute.xlu0 %794  ;;  %v752_v30 = vsel %vm654_vm3, %v747_v17, 0 }
 0x386   :  { %1371 = vpow2.f32 %v593_v13  ;;  %v800_v31 = vsel %vm654_vm3, %v795_v16, 0 }
 0x387   :  { %v1704_v6 = vpop.eup %1367  ;;  %1373 = vpow2.f32 %v597_v15 }
 0x388   :  { %v616_v7 = vsel %vm155_vm2, %v1704_v6, 0.0 }
 0x389   :  { %617 = vadd.xlane.f32.xlu1 %v616_v7 }
 0x38f   :  { %v1708_v8 = vpop.eup %1369 }
 0x390   :  { %v622_v9 = vsel %vm155_vm2, %v1708_v8, 0.0  ;;  %v1718_v19 = vpop.eup %1371 }
 0x391   :  { %623 = vadd.xlane.f32.xlu1 %v622_v9  ;;  %v1722_v18 = vpop.eup %1373 }
 0x397   :  { %890 = vrot.lane.b32.xlu0 %v1607_v32, %s1496_s2  ;;  %v613_v32 = vsel %vm155_vm2, %v1718_v19, 0.0 }
 0x3a2   :  { %938 = vrot.lane.b32.xlu1 %v1617_v37, %s1496_s2  ;;  %v619_v37 = vsel %vm155_vm2, %v1722_v18, 0.0 }
 0x3b5   :  { %v603_v20 = vpop.xlane.xlu0 %602  ;;  %v606_v21 = vpop.xlane.xlu1 %605 }
 0x3b6   :  { %1375 = vrcp.f32 %v603_v20  ;;  %614 = vadd.xlane.f32.xlu0 %v613_v32 }
 0x3b7   :  { %1377 = vrcp.f32 %v606_v21 }
 0x3b9   :  { %v843_v34 = vpop.permute.xlu1 %842 }
 0x3ba   :  { %620 = vadd.xlane.f32.xlu0 %v619_v37  ;;  %v848_v47 = vsel %vm654_vm3, %v843_v34, 0  ;;  %v1068_v37 = vld [vmem:[#allocation7 + $0x8] sm:$0xff] }
 0x3c0   :  { %v1376_v22 = vpop.eup %1375 }
 0x3c1   :  { %v1378_v23 = vpop.eup %1377  ;;  %v633_v26 = vmul.f32 %v1376_v22, %v1360_v52 }
 0x3c2   :  { %v634_v27 = vmul.f32 %v1378_v23, %v1362_v53 }
 0x3c3   :  { %v641_v28 = vpack.c.bf16 %v633_v26, %v633_v26 }
 0x3c4   :  { %v642_v29 = vpack.c.bf16 %v634_v27, %v634_v27 }
 0x3c5   :  { %1261 = vmatmul.mubr.msk.bf16.vlgmr.msra.gmra.mrb[16].mxu1 %vm155_vm2, %v641_v28  ;;  %v1069_v28 = vld [vmem:[#allocation7 + $0x10] sm:$0xff] }
 0x3c6   :  { %1267 = vmatmul.mubr.msk.bf16.vlgmr.msra.gmra.mrb[20].mxu0 %vm155_vm2, %v642_v29  ;;  %1271 = vmatpush3.bf16.msra.mxu1 %v752_v30  ;;  %v1070_v29 = vld [vmem:[#allocation7 + $0x18] sm:$0xff] }
 0x3c7   :  { %1277 = vmatpush3.bf16.msra.mxu0 %v800_v31  ;;  %1272 = vmatprep.mubr.msk.bf16.mxu1 %vm1491_vm0, %v1490_v0  ;;  %v1072_v34 = vpack.c.bf16 %v1070_v29, %v1069_v28 }
 0x3c8   :  { %1278 = vmatprep.mubr.msk.bf16.mxu0 %vm1491_vm0, %v1490_v0  ;;  %1282 = vmatprep.subr.bf16.mxu1 %v1490_v0 }
 0x3c9   :  { %1288 = vmatprep.subr.bf16.mxu0 %v1490_v0 }
 0x3d0   :  { %986 = vrot.lane.b32.xlu0 %v1620_v38, %s1496_s2 }
 0x40e   :  { %v609_v35 = vpop.xlane.xlu0 %608 }
 0x40f   :  { %1379 = vrcp.f32 %v609_v35  ;;  %v612_v36 = vpop.xlane.xlu1 %611 }
 0x410   :  { %1381 = vrcp.f32 %v612_v36 }
 0x412   :  { %v891_v44 = vpop.permute.xlu0 %890 }
 0x413   :  { %v896_v38 = vsel %vm654_vm3, %v891_v44, 0 }
 0x416   :  { %v618_v39 = vpop.xlane.xlu1 %617 }
 0x417   :  { %1383 = vrcp.f32 %v618_v39 }
 0x419   :  { %v1380_v40 = vpop.eup %1379 }
 0x41a   :  { %v1382_v41 = vpop.eup %1381  ;;  %v635_v42 = vmul.f32 %v1380_v40, %v1696_v63 }
 0x41b   :  { %v636_v43 = vmul.f32 %v1382_v41, %v1698_v1 }
 0x41c   :  { %v643_v45 = vpack.c.bf16 %v635_v42, %v635_v42 }
 0x41d   :  { %v644_v46 = vpack.c.bf16 %v636_v43, %v636_v43 }
 0x41e   :  { %1273 = vmatmul.mubr.msk.bf16.vlgmr.msra.gmra.mrb[20].mxu1 %vm155_vm2, %v643_v45  ;;  %v624_v51 = vpop.xlane.xlu1 %623 }
 0x41f   :  { %1279 = vmatmul.mubr.msk.bf16.vlgmr.msra.gmra.mrb[24].mxu0 %vm155_vm2, %v644_v46  ;;  %1283 = vmatpush3.bf16.msra.mxu1 %v848_v47  ;;  %1385 = vrcp.f32 %v624_v51 }
 0x420   :  { %1289 = vmatpush3.bf16.msra.mxu0 %v896_v38  ;;  %1290 = vmatprep.mubr.msk.bf16.mxu0 %vm1491_vm0, %v1490_v0 }
 0x421   :  { %1300 = vmatprep.subr.bf16.mxu0 %v1490_v0  ;;  %1284 = vmatprep.mubr.msk.bf16.mxu1 %vm1491_vm0, %v1490_v0  ;;  %v1384_v48 = vpop.eup %1383 }
 0x422   :  { %1294 = vmatprep.subr.bf16.mxu1 %v1490_v0  ;;  %v638_v49 = vmul.f32 %v1384_v48, %v1704_v6  ;;  %v939_v59 = vpop.permute.xlu1 %938 }
 0x423   :  { %v944_v62 = vsel %vm654_vm3, %v939_v59, 0 }
 0x424   :  { %v646_v50 = vpack.c.bf16 %v638_v49, %v638_v49 }
 0x427   :  { %1291 = vmatmul.mubr.msk.bf16.vlgmr.msra.gmra.mrb[28].mxu0 %vm155_vm2, %v646_v50 }
 0x428   :  { %1302 = vmatprep.mubr.msk.bf16.mxu0 %vm1491_vm0, %v1490_v0 }
 0x429   :  { %v1386_v53 = vpop.eup %1385 }
 0x42a   :  { %v640_v55 = vmul.f32 %v1386_v53, %v1708_v8 }
 0x42c   :  { %v648_v56 = vpack.c.bf16 %v640_v55, %v640_v55 }
 0x443   :  { %v615_v52 = vpop.xlane.xlu0 %614 }
 0x444   :  { %1387 = vrcp.f32 %v615_v52 }
 0x447   :  { %v621_v54 = vpop.xlane.xlu0 %620 }
 0x448   :  { %1389 = vrcp.f32 %v621_v54 }
 0x44b   :  { %v987_v24 = vpop.permute.xlu0 %986 }
 0x44c   :  { %v992_v25 = vsel %vm654_vm3, %v987_v24, 0 }
 0x44d   :  { %1301 = vmatpush3.bf16.msra.mxu0 %v992_v25 }
 0x44e   :  { %v1388_v57 = vpop.eup %1387 }
 0x44f   :  { %v637_v58 = vmul.f32 %v1388_v57, %v1718_v19 }
 0x450   :  { %1303 = vmatmul.mubr.msk.bf16.vlgmr.msra.gmra.mrb[32].mxu0 %vm155_vm2, %v648_v56 }
 0x451   :  { %v645_v60 = vpack.c.bf16 %v637_v58, %v637_v58  ;;  %v1162_v58 = vld [vmem:[%s1796_s4] ss:$0 sm:$0xff] }
 0x452   :  { %v1390_v61 = vpop.eup %1389 }
 0x453   :  { %1285 = vmatmul.mubr.msk.bf16.vlgmr.msra.gmra.mrb[24].mxu1 %vm155_vm2, %v645_v60  ;;  %v639_v63 = vmul.f32 %v1390_v61, %v1722_v18  ;;  %v1067_v18 = vld [vmem:[#allocation7] sm:$0xff] }
 0x454   :  { %1295 = vmatpush3.bf16.msra.mxu1 %v944_v62  ;;  %1296 = vmatprep.mubr.msk.bf16.mxu1 %vm1491_vm0, %v1490_v0  ;;  %v1071_v22 = vpack.c.bf16 %v1068_v37, %v1067_v18 }
 0x455   :  { %1306 = vmatprep.subr.bf16.mxu1 %v1490_v0  ;;  %v647_v1 = vpack.c.bf16 %v639_v63, %v639_v63 }
 0x45b   :  { %1297 = vmatmul.mubr.msk.bf16.vlgmr.msra.gmra.mrb[28].mxu1 %vm155_vm2, %v647_v1 }
 0x45c   :  { %1310 = vmatprep.mubr.msk.bf16.mxu1 %vm1491_vm0, %v1490_v0  ;;  %1307 = vmatpush3.bf16.msra.mxu1 %v1071_v22 }
 0x45d   :  { %1308 = vmatprep.subr.bf16.mxu1 %v1490_v0 }
 0x460   :  { %1309 = vmatpush3.bf16.msra.mxu1 %v1072_v34 }
 0x498   :  { %v692_v2 = vpop.f32.mrb[16].mxu1 }
 0x499   :  { %v740_v33 = vpop.f32.mrb[20].mxu0  ;;  %v1262_v3 = vpop.f32.mrb[17].mxu1 }
 0x49a   :  { %v1268_v4 = vpop.f32.mrb[21].mxu0  ;;  %v695_v5 = vpop.f32.mrb[18].mxu1 }
 0x49b   :  { %v743_v6 = vpop.f32.mrb[22].mxu0  ;;  %v1263_v7 = vpop.f32.mrb[19].mxu1 }
 0x49c   :  { %v1269_v8 = vpop.f32.mrb[23].mxu0 }
 0x4f1   :  { %v788_v9 = vpop.f32.mrb[20].mxu1 }
 0x4f2   :  { %v836_v10 = vpop.f32.mrb[24].mxu0  ;;  %v1274_v11 = vpop.f32.mrb[21].mxu1 }
 0x4f3   :  { %v1344_v12 = vpack.i.bf16 %v836_v10, %v788_v9  ;;  %v1280_v13 = vpop.f32.mrb[25].mxu0  ;;  %v791_v14 = vpop.f32.mrb[22].mxu1 }
 0x4f4   :  { %v839_v15 = vpop.f32.mrb[26].mxu0  ;;  %v1275_v16 = vpop.f32.mrb[23].mxu1 }
 0x4f5   :  { %1345 = vrot.lane.b32.xlu1 %v1344_v12, %s1488_s6  ;;  %v1281_v17 = vpop.f32.mrb[27].mxu0 }
 0x4fa   :  { %v932_v19 = vpop.f32.mrb[28].mxu0 }
 0x4fb   :  { %v1292_v20 = vpop.f32.mrb[29].mxu0 }
 0x4fc   :  { %v935_v21 = vpop.f32.mrb[30].mxu0 }
 0x4fd   :  { %v1293_v32 = vpop.f32.mrb[31].mxu0 }
 0x523   :  { %v1028_v23 = vpop.f32.mrb[32].mxu0 }
 0x524   :  { %v1304_v26 = vpop.f32.mrb[33].mxu0 }
 0x525   :  { %v1031_v27 = vpop.f32.mrb[34].mxu0 }
 0x526   :  { %v884_v30 = vpop.f32.mrb[24].mxu1  ;;  %v1305_v31 = vpop.f32.mrb[35].mxu0 }
 0x527   :  { %v1349_v35 = vpack.i.bf16 %v932_v19, %v884_v30  ;;  %v1286_v36 = vpop.f32.mrb[25].mxu1 }
 0x528   :  { %v887_v39 = vpop.f32.mrb[26].mxu1 }
 0x529   :  { %v1287_v40 = vpop.f32.mrb[27].mxu1  ;;  %1350 = vrot.lane.b32.xlu0 %v1349_v35, %s1497_s11 }
 0x52e   :  { %v980_v41 = vpop.f32.mrb[28].mxu1 }
 0x52f   :  { %v1354_v42 = vpack.i.bf16 %v1028_v23, %v980_v41  ;;  %v1298_v43 = vpop.f32.mrb[29].mxu1 }
 0x530   :  { %v983_v44 = vpop.f32.mrb[30].mxu1 }
 0x531   :  { %v1299_v0 = vpop.f32.mrb[31].mxu1  ;;  %1355 = vrot.lane.b32.xlu1 %v1354_v42, %s1498_s12 }
 0x567   :  { %v1346_v45 = vpop.permute.xlu1 %1345 }
 0x568   :  { %v1348_v47 = vunpack.i.h.bf16 %v1346_v45  ;;  %v1347_v38 = vunpack.i.l.bf16 %v1346_v45 }
 0x56a   :  { %v1059_v51 = vsel %vm155_vm2, %v740_v33, %v1348_v47  ;;  %v1058_v52 = vsel %vm155_vm2, %v692_v2, %v1347_v38 }
 0x59b   :  { %v1351_v46 = vpop.permute.xlu0 %1350 }
 0x59c   :  { %v1353_v48 = vunpack.i.h.bf16 %v1351_v46  ;;  %v1352_v49 = vunpack.i.l.bf16 %v1351_v46 }
 0x59e   :  { %v1062_v55 = vsel %vm1060_vm4, %v1059_v51, %v1353_v48  ;;  %v1061_v24 = vsel %vm1060_vm4, %v1058_v52, %v1352_v49 }
 0x5a3   :  { %v1356_v50 = vpop.permute.xlu1 %1355 }
 0x5a4   :  { %v1358_v53 = vunpack.i.h.bf16 %v1356_v50  ;;  %v1357_v54 = vunpack.i.l.bf16 %v1356_v50 }
 0x5a6   :  { %v1065_v25 = vsel %vm1063_vm5, %v1062_v55, %v1358_v53  ;;  %v1064_v57 = vsel %vm1063_vm5, %v1061_v24, %v1357_v54 }
 0x5a7   :  { %v1066_v56 = vpack.c.bf16 %v1065_v25, %v1064_v57 }
 0x5a9   :  { %1311 = vmatmul.mubr.msk.bf16.vlgmr.msra.gmra.mrb[32].mxu1 %vm79_vm1, %v1066_v56 }
 0x67c   :  { %v1117_v59 = vpop.f32.mrb[32].mxu1 }
 0x67d   :  { %v1118_v60 = vadd.f32 %v1162_v58, %v1117_v59  ;;  %v1312_v61 = vpop.f32.mrb[33].mxu1 }
 0x67e   :  { %v1120_v62 = vpop.f32.mrb[34].mxu1 }
 0x67f   :  { %1124 = vst.msk [vmem:[#allocation8] sm:$0xff] %vm79_vm1, %v1118_v60  ;;  %v1121_v63 = vadd.f32 %v1162_v58, %v1120_v62  ;;  %v1313_v1 = vpop.f32.mrb[35].mxu1 }
 0x681   :  { %1125 = vst.msk [vmem:[#allocation8 + $0x8] sm:$0xff] %vm79_vm1, %v1121_v63 }
 0x682   :  { %1468 = shalt.err (!%p1465_p0)
}
 0x683   :  { %s1469_s18 = scalar_lea.hbm %s1797_s5, 256 }
 0x684   :  { %p1470_p1 = scmp.ne.s32.totalorder %s1797_s5, %s1469_s18  ;;  %p1473_p2 = scmp.lt.u32.totalorder %s1469_s18, %s1797_s5 }
 0x686   :  { %p1475_p3 = pnand %p1473_p2, %p1470_p1 }
 0x688   :  { %1478 = shalt.err (!%p1475_p3)
}
 0x689   :  { %1137 = dma.vmem_to_hbm [thread:$0]  %s1132_s16, 256, %s1797_s5, [#allocation4], %s1487_s30, %s1487_s30, %s1488_s6  }
 0x68a   :  { %1483 = dma.done.wait [#allocation4], 256  }
 0x68b   :  { %1484 = vsyncadd [#allocation4], 4294967040 }
 0x68c   :  { %1141 = vsyncpa [#allocation3], 1 }
 0x68d   :  { %1142 = vsyncpa [#allocation6], 1 }
 0x68e   :  { %1143 = vsyncpa [#allocation4], 1 }

</bundles_post_ra>
